<compile_context>
chip_gen: v7x
topology: tpu7x:2x2x1
jax: 0.10.0
libtpu: 0.0.40
codegen_flags: <defaults>
</compile_context>

<pallas_src>
import jax
import jax.numpy as jnp
from jax.experimental import pallas as pl
from jax.experimental.pallas import tpu as pltpu

B = 4            # batch
S = 16           # sequence length
H = 32           # per-layer hidden size (scaled-down stand-in for 768)
NLAYERS = 4      # number of concatenated hidden states
CAT = NLAYERS * H  # concatenated feature dim (128; stand-in for 3072)
DENSE = 256      # dense hidden size (matches module)
NCLS = 13        # number of sentiment classes (matches module)
NCLS_PAD = 128   # lane-dense padded logits width (kernel-internal)
EPS = 1e-5       # PyTorch BatchNorm1d default eps


def _head_kernel(h1_ref, h2_ref, h3_ref, h4_ref,
                 w1_ref, b1_ref, w2_ref, b2_ref, out_ref):
    # torch.max(concat(h[-1..-4], dim=-1), dim=1) commutes with the concat:
    # pool each hidden state over seq and accumulate its partial matmul
    # against the matching [H, DENSE] slice of the (BN-folded) dense weight.
    acc = jnp.zeros((B, DENSE), jnp.float32)
    for i, h_ref in enumerate((h1_ref, h2_ref, h3_ref, h4_ref)):
        pooled = jnp.max(h_ref[...], axis=1)                       # [B, H]
        acc = acc + jnp.dot(pooled, w1_ref[i],
                            preferred_element_type=jnp.float32)    # [B, DENSE]

    # Linear(4H,256) + BatchNorm1d(256) folded -> bias add, then ReLU.
    x = jnp.maximum(acc + b1_ref[...], 0.0)                        # [B, DENSE]

    # Linear(256,13) + BatchNorm1d(13) folded, zero-padded to 128 lanes.
    y = jnp.dot(x, w2_ref[...], preferred_element_type=jnp.float32)
    out_ref[...] = (y + b2_ref[...]).astype(out_ref.dtype)         # [B, 128]


def _fold_params(p):
    """Fold eval-mode BatchNorm (running stats) + bias into the Linear weights."""
    s1 = p["g1"] * jax.lax.rsqrt(p["v1"] + EPS)                    # [1, DENSE]
    w1 = p["w1"] * s1                                              # [CAT, DENSE]
    b1 = (p["b1"] - p["m1"]) * s1 + p["be1"]                       # [1, DENSE]

    s2 = p["g2"] * jax.lax.rsqrt(p["v2"] + EPS)                    # [1, NCLS]
    w2 = p["w2"] * s2                                              # [DENSE, NCLS]
    b2 = (p["b2"] - p["m2"]) * s2 + p["be2"]                       # [1, NCLS]

    # Zero-pad the final projection to 128 output lanes (unmasked stores).
    w2 = jnp.pad(w2, ((0, 0), (0, NCLS_PAD - NCLS)))
    b2 = jnp.pad(b2, ((0, 0), (0, NCLS_PAD - NCLS)))
    # Split the dense weight per hidden-state chunk: [NLAYERS, H, DENSE].
    return w1.reshape(NLAYERS, H, DENSE), b1, w2, b2


def bert_sentiments_head(h1, h2, h3, h4, params):
    """Classification head of BertClassSentimentsLast.

    h1..h4 : [B, S, H] float32 — BERT hidden_states[-1], [-2], [-3], [-4].
    params : dict of head parameters (see init_params).
    Returns [B, NCLS] float32 logits.
    """
    w1, b1, w2, b2 = _fold_params(params)

    vmem = pl.BlockSpec(memory_space=pltpu.MemorySpace.VMEM)
    out_pad = pl.pallas_call(
        _head_kernel,
        out_shape=jax.ShapeDtypeStruct((B, NCLS_PAD), jnp.float32),
        in_specs=[vmem] * 8,
        out_specs=vmem,
    )(h1, h2, h3, h4, w1, b1, w2, b2)

    return out_pad[:, :NCLS]


def init_params(key):
    """Deterministic synthetic parameters matching the module's head shapes."""
    ks = jax.random.split(key, 6)
    w1 = jax.random.normal(ks[0], (CAT, DENSE), jnp.float32) * 0.02
    b1 = jax.random.normal(ks[1], (1, DENSE), jnp.float32) * 0.02
    w2 = jax.random.normal(ks[2], (DENSE, NCLS), jnp.float32) * 0.02
    b2 = jax.random.normal(ks[3], (1, NCLS), jnp.float32) * 0.02
    # BatchNorm running stats / affine params (deterministic, non-trivial).
    m1 = jax.random.normal(ks[4], (1, DENSE), jnp.float32) * 0.1
    v1 = jnp.abs(jax.random.normal(ks[5], (1, DENSE), jnp.float32)) + 0.5
    g1 = jnp.ones((1, DENSE), jnp.float32)
    be1 = jnp.zeros((1, DENSE), jnp.float32)
    m2 = jnp.zeros((1, NCLS), jnp.float32)
    v2 = jnp.ones((1, NCLS), jnp.float32)
    g2 = jnp.ones((1, NCLS), jnp.float32)
    be2 = jnp.zeros((1, NCLS), jnp.float32)
    return dict(w1=w1, b1=b1, g1=g1, be1=be1, m1=m1, v1=v1,
                w2=w2, b2=b2, g2=g2, be2=be2, m2=m2, v2=v2)


def reference_head(h1, h2, h3, h4, p):
    """Pure-JAX reference (unfused, matches the PyTorch forward in eval mode)."""
    last = jnp.concatenate([h1, h2, h3, h4], axis=-1)              # [B, S, 4H]
    pooled = jnp.max(last, axis=1)                                 # [B, 4H]
    x = pooled @ p["w1"] + p["b1"]
    x = (x - p["m1"]) / jnp.sqrt(p["v1"] + EPS) * p["g1"] + p["be1"]
    x = jnp.maximum(x, 0.0)
    x = x @ p["w2"] + p["b2"]
    x = (x - p["m2"]) / jnp.sqrt(p["v2"] + EPS) * p["g2"] + p["be2"]
    return x


if __name__ == "__main__":
    key = jax.random.PRNGKey(0)
    k_h, k_p = jax.random.split(key)
    kh = jax.random.split(k_h, 4)
    # Synthetic stand-ins for hidden_states[-1], [-2], [-3], [-4].
    h1 = jax.random.normal(kh[0], (B, S, H), jnp.float32)
    h2 = jax.random.normal(kh[1], (B, S, H), jnp.float32)
    h3 = jax.random.normal(kh[2], (B, S, H), jnp.float32)
    h4 = jax.random.normal(kh[3], (B, S, H), jnp.float32)
    params = init_params(k_p)

    head = jax.jit(bert_sentiments_head)
    out = head(h1, h2, h3, h4, params)
    out = jax.block_until_ready(out)

    ref = reference_head(h1, h2, h3, h4, params)
    assert out.shape == (B, NCLS)
    assert jnp.allclose(out, ref, atol=1e-4, rtol=1e-4), "mismatch vs reference"
    print("KERNEL_OK")
</pallas_src>

<mosaic_0001>
module attributes {stable_mosaic.version = 11 : i64} {
  func.func @_head_kernel(%arg0: memref<4x16x32xf32, #tpu.memory_space<vmem>>, %arg1: memref<4x16x32xf32, #tpu.memory_space<vmem>>, %arg2: memref<4x16x32xf32, #tpu.memory_space<vmem>>, %arg3: memref<4x16x32xf32, #tpu.memory_space<vmem>>, %arg4: memref<4x32x256xf32, #tpu.memory_space<vmem>>, %arg5: memref<1x256xf32, #tpu.memory_space<vmem>>, %arg6: memref<256x128xf32, #tpu.memory_space<vmem>>, %arg7: memref<1x128xf32, #tpu.memory_space<vmem>>, %arg8: memref<4x128xf32, #tpu.memory_space<vmem>>) attributes {dimension_semantics = [], scalar_prefetch = 0 : i64, scratch_operands = 0 : i64, tpu.core_type = #tpu.core_type<tc>} {
    %cst = arith.constant 0.000000e+00 : f32
    %0 = vector.broadcast %cst : f32 to vector<4x256xf32>
    %c0 = arith.constant 0 : index
    %c0_0 = arith.constant 0 : index
    %c0_1 = arith.constant 0 : index
    %1 = vector.load %arg0[%c0, %c0_0, %c0_1] : memref<4x16x32xf32, #tpu.memory_space<vmem>>, vector<4x16x32xf32>
    %cst_2 = arith.constant dense<0xFF800000> : vector<4x32xf32>
    %2 = vector.multi_reduction <maximumf>, %1, %cst_2 [1] : vector<4x16x32xf32> to vector<4x32xf32>
    %c0_3 = arith.constant 0 : index
    %c0_4 = arith.constant 0 : index
    %c0_5 = arith.constant 0 : index
    %3 = vector.load %arg4[%c0_3, %c0_4, %c0_5] : memref<4x32x256xf32, #tpu.memory_space<vmem>>, vector<1x32x256xf32>
    %4 = vector.shape_cast %3 : vector<1x32x256xf32> to vector<32x256xf32>
    %cst_6 = arith.constant dense<0.000000e+00> : vector<4x256xf32>
    %5 = tpu.matmul %2, %4, %cst_6 {dimension_numbers = #tpu.dot_dimension_numbers<[1], [0], [0], [1], [0, 0, 1, 1], [], []>} : vector<4x32xf32>, vector<32x256xf32>, vector<4x256xf32> -> vector<4x256xf32>
    %6 = arith.addf %0, %5 : vector<4x256xf32>
    %c0_7 = arith.constant 0 : index
    %c0_8 = arith.constant 0 : index
    %c0_9 = arith.constant 0 : index
    %7 = vector.load %arg1[%c0_7, %c0_8, %c0_9] : memref<4x16x32xf32, #tpu.memory_space<vmem>>, vector<4x16x32xf32>
    %cst_10 = arith.constant dense<0xFF800000> : vector<4x32xf32>
    %8 = vector.multi_reduction <maximumf>, %7, %cst_10 [1] : vector<4x16x32xf32> to vector<4x32xf32>
    %c1 = arith.constant 1 : index
    %c0_11 = arith.constant 0 : index
    %c0_12 = arith.constant 0 : index
    %9 = vector.load %arg4[%c1, %c0_11, %c0_12] : memref<4x32x256xf32, #tpu.memory_space<vmem>>, vector<1x32x256xf32>
    %10 = vector.shape_cast %9 : vector<1x32x256xf32> to vector<32x256xf32>
    %cst_13 = arith.constant dense<0.000000e+00> : vector<4x256xf32>
    %11 = tpu.matmul %8, %10, %cst_13 {dimension_numbers = #tpu.dot_dimension_numbers<[1], [0], [0], [1], [0, 0, 1, 1], [], []>} : vector<4x32xf32>, vector<32x256xf32>, vector<4x256xf32> -> vector<4x256xf32>
    %12 = arith.addf %6, %11 : vector<4x256xf32>
    %c0_14 = arith.constant 0 : index
    %c0_15 = arith.constant 0 : index
    %c0_16 = arith.constant 0 : index
    %13 = vector.load %arg2[%c0_14, %c0_15, %c0_16] : memref<4x16x32xf32, #tpu.memory_space<vmem>>, vector<4x16x32xf32>
    %cst_17 = arith.constant dense<0xFF800000> : vector<4x32xf32>
    %14 = vector.multi_reduction <maximumf>, %13, %cst_17 [1] : vector<4x16x32xf32> to vector<4x32xf32>
    %c2 = arith.constant 2 : index
    %c0_18 = arith.constant 0 : index
    %c0_19 = arith.constant 0 : index
    %15 = vector.load %arg4[%c2, %c0_18, %c0_19] : memref<4x32x256xf32, #tpu.memory_space<vmem>>, vector<1x32x256xf32>
    %16 = vector.shape_cast %15 : vector<1x32x256xf32> to vector<32x256xf32>
    %cst_20 = arith.constant dense<0.000000e+00> : vector<4x256xf32>
    %17 = tpu.matmul %14, %16, %cst_20 {dimension_numbers = #tpu.dot_dimension_numbers<[1], [0], [0], [1], [0, 0, 1, 1], [], []>} : vector<4x32xf32>, vector<32x256xf32>, vector<4x256xf32> -> vector<4x256xf32>
    %18 = arith.addf %12, %17 : vector<4x256xf32>
    %c0_21 = arith.constant 0 : index
    %c0_22 = arith.constant 0 : index
    %c0_23 = arith.constant 0 : index
    %19 = vector.load %arg3[%c0_21, %c0_22, %c0_23] : memref<4x16x32xf32, #tpu.memory_space<vmem>>, vector<4x16x32xf32>
    %cst_24 = arith.constant dense<0xFF800000> : vector<4x32xf32>
    %20 = vector.multi_reduction <maximumf>, %19, %cst_24 [1] : vector<4x16x32xf32> to vector<4x32xf32>
    %c3 = arith.constant 3 : index
    %c0_25 = arith.constant 0 : index
    %c0_26 = arith.constant 0 : index
    %21 = vector.load %arg4[%c3, %c0_25, %c0_26] : memref<4x32x256xf32, #tpu.memory_space<vmem>>, vector<1x32x256xf32>
    %22 = vector.shape_cast %21 : vector<1x32x256xf32> to vector<32x256xf32>
    %cst_27 = arith.constant dense<0.000000e+00> : vector<4x256xf32>
    %23 = tpu.matmul %20, %22, %cst_27 {dimension_numbers = #tpu.dot_dimension_numbers<[1], [0], [0], [1], [0, 0, 1, 1], [], []>} : vector<4x32xf32>, vector<32x256xf32>, vector<4x256xf32> -> vector<4x256xf32>
    %24 = arith.addf %18, %23 : vector<4x256xf32>
    %c0_28 = arith.constant 0 : index
    %c0_29 = arith.constant 0 : index
    %25 = vector.load %arg5[%c0_28, %c0_29] : memref<1x256xf32, #tpu.memory_space<vmem>>, vector<1x256xf32>
    %26 = vector.broadcast %25 : vector<1x256xf32> to vector<4x256xf32>
    %27 = arith.addf %24, %26 : vector<4x256xf32>
    %cst_30 = arith.constant 0.000000e+00 : f32
    %28 = vector.broadcast %cst_30 : f32 to vector<4x256xf32>
    %29 = arith.maximumf %27, %28 : vector<4x256xf32>
    %c0_31 = arith.constant 0 : index
    %c0_32 = arith.constant 0 : index
    %30 = vector.load %arg6[%c0_31, %c0_32] : memref<256x128xf32, #tpu.memory_space<vmem>>, vector<256x128xf32>
    %cst_33 = arith.constant dense<0.000000e+00> : vector<4x128xf32>
    %31 = tpu.matmul %29, %30, %cst_33 {dimension_numbers = #tpu.dot_dimension_numbers<[1], [0], [0], [1], [0, 0, 1, 1], [], []>} : vector<4x256xf32>, vector<256x128xf32>, vector<4x128xf32> -> vector<4x128xf32>
    %c0_34 = arith.constant 0 : index
    %c0_35 = arith.constant 0 : index
    %32 = vector.load %arg7[%c0_34, %c0_35] : memref<1x128xf32, #tpu.memory_space<vmem>>, vector<1x128xf32>
    %33 = vector.broadcast %32 : vector<1x128xf32> to vector<4x128xf32>
    %34 = arith.addf %31, %33 : vector<4x128xf32>
    %c0_36 = arith.constant 0 : index
    %c0_37 = arith.constant 0 : index
    %35 = vector.load %arg8[%c0_36, %c0_37] : memref<4x128xf32, #tpu.memory_space<vmem>>, vector<4x128xf32>
    tpu.vector_store %arg8[%c0_36, %c0_37], %34 {strides = array<i32>} : memref<4x128xf32, #tpu.memory_space<vmem>>, vector<4x128xf32>,
    return
  }
}

</mosaic_0001>

<bundles_post_ra>
// kernel: bert_sentiments_head.1
= control target key start
LH: loop header
LB: loop body
LE: loop exit
PB: predicated region body
PF: predicated region fallthrough
CT: control target
= control target key end

     0   :  { %v869_v7 = vmov 0.0   ;;  %vm38_vm0 = vcmask 261120   ;;  %vm140_vm1 = vcmask 1041409   ;;  %vm142_vm2 = vcmask 1042434   ;;  %s1358_s0 = inlined_call_operand.vmem [shape: f32[4,16,32], index: 0, kind: input, shape index: {}]   ;;  %s1359_s1 = inlined_call_operand.vmem [shape: f32[4,16,32], index: 1, kind: input, shape index: {}]   ;;  %s1360_s2 = inlined_call_operand.vmem [shape: f32[4,16,32], index: 2, kind: input, shape index: {}]   ;;  %s1361_s3 = inlined_call_operand.vmem [shape: f32[4,16,32], index: 3, kind: input, shape index: {}]   ;;  %s1362_s4 = inlined_call_operand.vmem [shape: f32[4,32,256], index: 4, kind: input, shape index: {}]   ;;  %s1363_s5 = inlined_call_operand.vmem [shape: f32[1,256], index: 5, kind: input, shape index: {}]   ;;  %s1364_s6 = inlined_call_operand.vmem [shape: f32[256,128], index: 6, kind: input, shape index: {}]   ;;  %s1365_s7 = inlined_call_operand.vmem [shape: f32[1,128], index: 7, kind: input, shape index: {}]   ;;  %s1366_s8 = inlined_call_operand.hbm [shape: f32[4,128], index: 8, kind: output, shape index: {}]  }
   0x1   :  { %v710_v0 = vld [vmem:[%s1362_s4 + $0x48] sm:$0xff]  ;;  %v712_v1 = vld [vmem:[%s1362_s4 + $0x58] sm:$0xff]  ;;  %v709_v2 = vld [vmem:[%s1362_s4 + $0x40] sm:$0xff]  ;;  %212 = vmatprep.mubr.f32.mxu0 %v869_v7  ;;  %vm144_vm3 = vcmask 1043459  }
   0x2   :  { %v773_v3 = vpack.c.bf16 %v712_v1, %v710_v0  ;;  %v711_v4 = vld [vmem:[%s1362_s4 + $0x50] sm:$0xff]  ;;  %v714_v5 = vld [vmem:[%s1362_s4 + $0x68] sm:$0xff]  ;;  %v716_v6 = vld [vmem:[%s1362_s4 + $0x78] sm:$0xff] }
   0x3   :  { %v775_v8 = vpack.c.bf16 %v711_v4, %v709_v2  ;;  %v777_v9 = vpack.c.bf16 %v716_v6, %v714_v5  ;;  %v713_v10 = vld [vmem:[%s1362_s4 + $0x60] sm:$0xff]  ;;  %v715_v11 = vld [vmem:[%s1362_s4 + $0x70] sm:$0xff]  ;;  %v76_v12 = vld [vmem:[%s1362_s4 + $0x8] sm:$0xff] }
   0x4   :  { %774 = vmatprep.subr.bf16.mxu0 %v773_v3  ;;  %v78_v13 = vld [vmem:[%s1362_s4 + $0x18] sm:$0xff]  ;;  %v83_v14 = vld [vmem:[%s1359_s1] sm:$0xff]  ;;  %v84_v15 = vld [vmem:[%s1359_s1 + $0x8] sm:$0xff]  ;;  %v779_v16 = vpack.c.bf16 %v715_v11, %v713_v10 }
   0x5   :  { %776 = vmatpush1.bf16.msra.mxu0 %v775_v8  ;;  %v781_v17 = vpack.c.bf16 %v78_v13, %v76_v12  ;;  %v85_v18 = vld [vmem:[%s1359_s1 + $0x10] sm:$0xff]  ;;  %v86_v19 = vld [vmem:[%s1359_s1 + $0x18] sm:$0xff]  ;;  %v87_v20 = vld [vmem:[%s1359_s1 + $0x20] sm:$0xff]  ;;  %v91_v21 = vsel %vm38_vm0, %v83_v14, -inf  ;;  %v92_v22 = vsel %vm38_vm0, %v84_v15, -inf }
   0x6   :  { %778 = vmatprep.subr.bf16.mxu0 %v777_v9  ;;  %v88_v23 = vld [vmem:[%s1359_s1 + $0x28] sm:$0xff]  ;;  %v89_v24 = vld [vmem:[%s1359_s1 + $0x30] sm:$0xff]  ;;  %v90_v25 = vld [vmem:[%s1359_s1 + $0x38] sm:$0xff]  ;;  %v93_v26 = vmax.f32 %v91_v21, %v92_v22  ;;  %v100_v27 = vsel %vm38_vm0, %v85_v18, -inf  ;;  %v101_v28 = vsel %vm38_vm0, %v86_v19, -inf  ;;  %v109_v29 = vsel %vm38_vm0, %v87_v20, -inf }
   0x7   :  { %v102_v30 = vmax.f32 %v100_v27, %v101_v28  ;;  %v110_v31 = vsel %vm38_vm0, %v88_v23, -inf  ;;  %v118_v32 = vsel %vm38_vm0, %v89_v24, -inf  ;;  %v119_v33 = vsel %vm38_vm0, %v90_v25, -inf  ;;  %v982_v34 = vld [vmem:[%s1362_s4] sm:$0xff]  ;;  %v987_v35 = vld [vmem:[%s1362_s4 + $0x10] sm:$0xff]  ;;  %v992_v36 = vld [vmem:[%s1362_s4 + $0x28] sm:$0xff] }
   0x8   :  { %v94_v37 = vrot.slane %v93_v26, 4  ;;  %v111_v38 = vmax.f32 %v109_v29, %v110_v31  ;;  %v120_v39 = vmax.f32 %v118_v32, %v119_v33  ;;  %v997_v40 = vld [vmem:[%s1362_s4 + $0x38] sm:$0xff]  ;;  %v1002_v41 = vld [vmem:[%s1362_s4 + $0x20] sm:$0xff]  ;;  %v1007_v42 = vld [vmem:[%s1362_s4 + $0x30] sm:$0xff]  ;;  %v783_v44 = vpack.c.bf16 %v987_v35, %v982_v34 }
   0x9   :  { %780 = vmatpush1.bf16.msra.mxu0 %v779_v16  ;;  %v103_v43 = vrot.slane %v102_v30, 4  ;;  %v785_v45 = vpack.c.bf16 %v997_v40, %v992_v36  ;;  %v30_v46 = vld [vmem:[%s1358_s0] sm:$0xff]  ;;  %v787_v50 = vpack.c.bf16 %v1007_v42, %v1002_v41  ;;  %v31_v51 = vld [vmem:[%s1358_s0 + $0x8] sm:$0xff]  ;;  %v32_v52 = vld [vmem:[%s1358_s0 + $0x10] sm:$0xff] }
   0xa   :  { %782 = vmatprep.subr.bf16.mxu0 %v781_v17  ;;  %v95_v47 = vmax.f32 %v93_v26, %v94_v37  ;;  %v112_v48 = vrot.slane %v111_v38, 4  ;;  %v121_v49 = vrot.slane %v120_v39, 4  ;;  %v33_v53 = vld [vmem:[%s1358_s0 + $0x18] sm:$0xff]  ;;  %v34_v55 = vld [vmem:[%s1358_s0 + $0x20] sm:$0xff]  ;;  %v35_v56 = vld [vmem:[%s1358_s0 + $0x28] sm:$0xff]  ;;  %v39_v57 = vsel %vm38_vm0, %v30_v46, -inf }
   0xb   :  { %v104_v54 = vmax.f32 %v102_v30, %v103_v43  ;;  %v40_v58 = vsel %vm38_vm0, %v31_v51, -inf  ;;  %v48_v59 = vsel %vm38_vm0, %v32_v52, -inf  ;;  %v36_v63 = vld [vmem:[%s1358_s0 + $0x30] sm:$0xff]  ;;  %v49_v2 = vsel %vm38_vm0, %v33_v53, -inf  ;;  %v37_v9 = vld [vmem:[%s1358_s0 + $0x38] sm:$0xff]  ;;  %v1049_v20 = vld [vmem:[%s1362_s4 + $0x88] sm:$0xff] }
   0xc   :  { %v96_v60 = vrot.slane %v95_v47, 2  ;;  %v113_v61 = vmax.f32 %v111_v38, %v112_v48  ;;  %v122_v62 = vmax.f32 %v120_v39, %v121_v49  ;;  %v41_v0 = vmax.f32 %v39_v57, %v40_v58  ;;  %v1054_v21 = vld [vmem:[%s1362_s4 + $0x98] sm:$0xff]  ;;  %v1060_v29 = vld [vmem:[%s1362_s4 + $0x80] sm:$0xff]  ;;  %v1065_v37 = vld [vmem:[%s1362_s4 + $0x90] sm:$0xff] }
   0xd   :  { %v105_v1 = vrot.slane %v104_v54, 2  ;;  %v57_v3 = vsel %vm38_vm0, %v34_v55, -inf  ;;  %v58_v4 = vsel %vm38_vm0, %v35_v56, -inf  ;;  %v50_v12 = vmax.f32 %v48_v59, %v49_v2  ;;  %v1070_v38 = vld [vmem:[%s1362_s4 + $0xa8] sm:$0xff]  ;;  %v1075_v39 = vld [vmem:[%s1362_s4 + $0xb8] sm:$0xff]  ;;  %v1082_v49 = vld [vmem:[%s1362_s4 + $0xa0] sm:$0xff] }
   0xe   :  { %v97_v5 = vmax.f32 %v95_v47, %v96_v60  ;;  %v114_v6 = vrot.slane %v113_v61, 2  ;;  %v123_v8 = vrot.slane %v122_v62, 2  ;;  %v42_v10 = vrot.slane %v41_v0, 4  ;;  %v1088_v55 = vld [vmem:[%s1362_s4 + $0xb0] sm:$0xff]  ;;  %v299_v56 = vld [vmem:[%s1360_s2] sm:$0xff]  ;;  %v300_v57 = vld [vmem:[%s1360_s2 + $0x8] sm:$0xff] }
   0xf   :  { %v106_v11 = vmax.f32 %v104_v54, %v105_v1  ;;  %v59_v13 = vmax.f32 %v57_v3, %v58_v4  ;;  %v66_v14 = vsel %vm38_vm0, %v36_v63, -inf  ;;  %v51_v22 = vrot.slane %v50_v12, 4  ;;  %v302_v3 = vld [vmem:[%s1360_s2 + $0x18] sm:$0xff]  ;;  %v303_v4 = vld [vmem:[%s1360_s2 + $0x20] sm:$0xff] }
  0x10   :  { %v98_v15 = vrot.slane %v97_v5, 1  ;;  %v115_v16 = vmax.f32 %v113_v61, %v114_v6  ;;  %v124_v17 = vmax.f32 %v122_v62, %v123_v8  ;;  %v43_v18 = vmax.f32 %v41_v0, %v42_v10  ;;  %v301_v62 = vld [vmem:[%s1360_s2 + $0x10] sm:$0xff]  ;;  %v1144_v36 = vld [vmem:[%s1362_s4 + $0xd8] sm:$0xff]  ;;  %v434_v41 = vld [vmem:[%s1361_s3] sm:$0xff] }
  0x11   :  { %v107_v19 = vrot.slane %v106_v11, 1  ;;  %v60_v23 = vrot.slane %v59_v13, 4  ;;  %v67_v24 = vsel %vm38_vm0, %v37_v9, -inf  ;;  %v52_v31 = vmax.f32 %v50_v12, %v51_v22 }
  0x12   :  { %v99_v25 = vmax.f32 %v97_v5, %v98_v15  ;;  %v116_v26 = vrot.slane %v115_v16, 1  ;;  %v125_v27 = vrot.slane %v124_v17, 1  ;;  %v44_v28 = vrot.slane %v43_v18, 2  ;;  %v304_v5 = vld [vmem:[%s1360_s2 + $0x28] sm:$0xff]  ;;  %v306_v15 = vld [vmem:[%s1360_s2 + $0x38] sm:$0xff] }
  0x13   :  { %v108_v30 = vmax.f32 %v106_v11, %v107_v19  ;;  %v61_v32 = vmax.f32 %v59_v13, %v60_v23  ;;  %v68_v33 = vmax.f32 %v66_v14, %v67_v24  ;;  %v789_v47 = vpack.c.bf16 %v1054_v21, %v1049_v20  ;;  %v305_v14 = vld [vmem:[%s1360_s2 + $0x30] sm:$0xff]  ;;  %v1139_v21 = vld [vmem:[%s1362_s4 + $0xc8] sm:$0xff] }
  0x14   :  { %v117_v43 = vmax.f32 %v115_v16, %v116_v26  ;;  %v126_v46 = vmax.f32 %v124_v17, %v125_v27  ;;  %v45_v48 = vmax.f32 %v43_v18, %v44_v28  ;;  %v53_v52 = vrot.slane %v52_v31, 2  ;;  %v1156_v26 = vld [vmem:[%s1362_s4 + $0xd0] sm:$0xff] }
  0x15   :  { %v141_v51 = vsel %vm140_vm1, %v108_v30, %v99_v25  ;;  %v62_v53 = vrot.slane %v61_v32, 2  ;;  %v69_v54 = vrot.slane %v68_v33, 4  ;;  %v791_v60 = vpack.c.bf16 %v1065_v37, %v1060_v29  ;;  %v1151_v25 = vld [vmem:[%s1362_s4 + $0xc0] sm:$0xff] }
  0x16   :  { %v143_v58 = vsel %vm142_vm2, %v117_v43, %v141_v51  ;;  %v46_v59 = vrot.slane %v45_v48, 1  ;;  %v793_v61 = vpack.c.bf16 %v1075_v39, %v1070_v38  ;;  %v54_v0 = vmax.f32 %v52_v31, %v53_v52 }
  0x17   :  { %v145_v63 = vsel %vm144_vm3, %v126_v46, %v143_v58  ;;  %v63_v1 = vmax.f32 %v61_v32, %v62_v53  ;;  %v70_v2 = vmax.f32 %v68_v33, %v69_v54  ;;  %v795_v8 = vpack.c.bf16 %v1088_v55, %v1082_v49  ;;  %v1165_v32 = vld [vmem:[%s1362_s4 + $0xe8] sm:$0xff]  ;;  %v1170_v33 = vld [vmem:[%s1362_s4 + $0xf8] sm:$0xff] }
  0x18   :  { %717 = vmatmul.mubr.msk.f32.vlgmr.msra.gmra.mrb[0].mxu0 %vm38_vm0, %v145_v63  ;;  %v47_v6 = vmax.f32 %v45_v48, %v46_v59  ;;  %v307_v9 = vsel %vm38_vm0, %v299_v56, -inf  ;;  %v308_v10 = vsel %vm38_vm0, %v300_v57, -inf  ;;  %v55_v11 = vrot.slane %v54_v0, 1  ;;  %v435_v48 = vld [vmem:[%s1361_s3 + $0x8] sm:$0xff]  ;;  %v437_v59 = vld [vmem:[%s1361_s3 + $0x18] sm:$0xff] }
  0x19   :  { %784 = vmatpush1.bf16.msra.mxu0 %v783_v44  ;;  %292 = vmatprep.mubr.f32.mxu0 %v869_v7  ;;  %v64_v12 = vrot.slane %v63_v1, 1  ;;  %v71_v13 = vrot.slane %v70_v2, 2  ;;  %v309_v16 = vmax.f32 %v307_v9, %v308_v10  ;;  %v316_v34 = vsel %vm38_vm0, %v301_v62, -inf  ;;  %v438_v62 = vld [vmem:[%s1361_s3 + $0x20] sm:$0xff] }
  0x1a   :  { %786 = vmatprep.subr.bf16.mxu0 %v785_v45  ;;  %v317_v35 = vsel %vm38_vm0, %v302_v3, -inf  ;;  %v325_v44 = vsel %vm38_vm0, %v303_v4, -inf  ;;  %v326_v17 = vsel %vm38_vm0, %v304_v5, -inf  ;;  %v56_v18 = vmax.f32 %v54_v0, %v55_v11 }
  0x1b   :  { %v65_v19 = vmax.f32 %v63_v1, %v64_v12  ;;  %v72_v20 = vmax.f32 %v70_v2, %v71_v13  ;;  %v310_v40 = vrot.slane %v309_v16, 4  ;;  %v318_v45 = vmax.f32 %v316_v34, %v317_v35 }
  0x1c   :  { %v327_v22 = vmax.f32 %v325_v44, %v326_v17  ;;  %v334_v23 = vsel %vm38_vm0, %v305_v14, -inf  ;;  %v335_v24 = vsel %vm38_vm0, %v306_v15, -inf  ;;  %v223_v28 = vsel %vm140_vm1, %v56_v18, %v47_v6 }
  0x1d   :  { %788 = vmatpush1.bf16.msra.mxu0 %v787_v50  ;;  %v73_v27 = vrot.slane %v72_v20, 1  ;;  %v311_v30 = vmax.f32 %v309_v16, %v310_v40  ;;  %v336_v31 = vmax.f32 %v334_v23, %v335_v24  ;;  %v224_v42 = vsel %vm142_vm2, %v65_v19, %v223_v28 }
  0x1e   :  { %790 = vmatprep.subr.bf16.mxu0 %v789_v47  ;;  %v797_v50 = vpack.c.bf16 %v1144_v36, %v1139_v21  ;;  %v319_v43 = vrot.slane %v318_v45, 4  ;;  %v328_v46 = vrot.slane %v327_v22, 4  ;;  %v799_v54 = vpack.c.bf16 %v1156_v26, %v1151_v25  ;;  %v436_v47 = vld [vmem:[%s1361_s3 + $0x10] sm:$0xff] }
  0x1f   :  { %v74_v51 = vmax.f32 %v72_v20, %v73_v27  ;;  %v312_v52 = vrot.slane %v311_v30, 2  ;;  %v337_v53 = vrot.slane %v336_v31, 4  ;;  %v801_v58 = vpack.c.bf16 %v1170_v33, %v1165_v32 }
  0x20   :  { %v320_v56 = vmax.f32 %v318_v45, %v319_v43  ;;  %v329_v57 = vmax.f32 %v327_v22, %v328_v46  ;;  %v442_v63 = vsel %vm38_vm0, %v434_v41, -inf }
  0x21   :  { %13 = vsyncpa [#allocation3], 0  ;;  %v225_v0 = vsel %vm144_vm3, %v74_v51, %v224_v42  ;;  %v313_v1 = vmax.f32 %v311_v30, %v312_v52  ;;  %v338_v2 = vmax.f32 %v336_v31, %v337_v53  ;;  %v443_v3 = vsel %vm38_vm0, %v435_v48, -inf  ;;  %v439_v6 = vld [vmem:[%s1361_s3 + $0x28] sm:$0xff]  ;;  %v440_v9 = vld [vmem:[%s1361_s3 + $0x30] sm:$0xff]  ;;  %s870_s25 = smov [#allocation2]  }
  0x22   :  { %718 = vmatmul.mubr.msk.f32.vlgmr.msra.gmra.mrb[0].mxu0 %vm38_vm0, %v225_v0  ;;  %v321_v4 = vrot.slane %v320_v56, 2  ;;  %v330_v5 = vrot.slane %v329_v57, 2  ;;  %v444_v10 = vmax.f32 %v442_v63, %v443_v3  ;;  %v451_v11 = vsel %vm38_vm0, %v436_v47, -inf  ;;  %v441_v35 = vld [vmem:[%s1361_s3 + $0x38] sm:$0xff]  ;;  %v602_v44 = vld [vmem:[%s1364_s6 + $0x88] sm:$0xff]  ;;  %v585_v36 = vld [vmem:[%s1364_s6] sm:$0xff] }
  0x23   :  { %792 = vmatpush1.bf16.msra.mxu0 %v791_v60  ;;  %425 = vmatprep.mubr.f32.mxu0 %v869_v7  ;;  %v314_v12 = vrot.slane %v313_v1, 1  ;;  %v339_v13 = vrot.slane %v338_v2, 2  ;;  %v452_v14 = vsel %vm38_vm0, %v437_v59, -inf  ;;  %v460_v15 = vsel %vm38_vm0, %v438_v62, -inf  ;;  %v601_v60 = vld [vmem:[%s1364_s6 + $0x80] sm:$0xff]  ;;  %v586_v40 = vld [vmem:[%s1364_s6 + $0x8] sm:$0xff] }
  0x24   :  { %794 = vmatprep.subr.bf16.mxu0 %v793_v61  ;;  %v322_v16 = vmax.f32 %v320_v56, %v321_v4  ;;  %v331_v34 = vmax.f32 %v329_v57, %v330_v5  ;;  %v445_v29 = vrot.slane %v444_v10, 4  ;;  %v453_v37 = vmax.f32 %v451_v11, %v452_v14  ;;  %v603_v27 = vld [vmem:[%s1364_s6 + $0x90] sm:$0xff]  ;;  %v604_v28 = vld [vmem:[%s1364_s6 + $0x98] sm:$0xff]  ;;  %v606_v51 = vld [vmem:[%s1364_s6 + $0xa8] sm:$0xff]  ;;  %s701_s26 = sshll.u32 %s870_s25, 4  ;;  %s702_s26 = int_to_ptr.vmem [resolvable:$true] %s701_s26 }
  0x25   :  { %v315_v17 = vmax.f32 %v313_v1, %v314_v12  ;;  %v340_v18 = vmax.f32 %v338_v2, %v339_v13  ;;  %v461_v38 = vsel %vm38_vm0, %v439_v6, -inf  ;;  %v469_v39 = vsel %vm38_vm0, %v440_v9, -inf  ;;  %v587_v49 = vld [vmem:[%s1364_s6 + $0x10] sm:$0xff]  ;;  %v588_v55 = vld [vmem:[%s1364_s6 + $0x18] sm:$0xff]  ;;  %v732_v59 = vld [vmem:[%s1362_s4 + $0xe0] sm:$0xff]  ;;  %p850_p1 = scmp.lt.s32.totalorder %s702_s26, %s702_s26 }
  0x26   :  { %v323_v61 = vrot.slane %v322_v16, 1  ;;  %v332_v19 = vrot.slane %v331_v34, 1  ;;  %v446_v20 = vmax.f32 %v444_v10, %v445_v29  ;;  %v454_v21 = vrot.slane %v453_v37, 4  ;;  %v734_v62 = vld [vmem:[%s1362_s4 + $0xf0] sm:$0xff]  ;;  %v589_v6 = vld [vmem:[%s1364_s6 + $0x20] sm:$0xff]  ;;  %v590_v9 = vld [vmem:[%s1364_s6 + $0x28] sm:$0xff] }
  0x27   :  { %796 = vmatpush1.bf16.msra.mxu0 %v795_v8  ;;  %v341_v45 = vrot.slane %v340_v18, 1  ;;  %v462_v22 = vmax.f32 %v460_v15, %v461_v38  ;;  %v470_v23 = vsel %vm38_vm0, %v441_v35, -inf  ;;  %v805_v24 = vpack.c.bf16 %v602_v44, %v601_v60  ;;  %v607_v12 = vld [vmem:[%s1364_s6 + $0xb0] sm:$0xff]  ;;  %v608_v13 = vld [vmem:[%s1364_s6 + $0xb8] sm:$0xff]  ;;  %v609_v32 = vld [vmem:[%s1364_s6 + $0xc0] sm:$0xff] }
  0x28   :  { %798 = vmatprep.subr.bf16.mxu0 %v797_v50  ;;  %v324_v30 = vmax.f32 %v322_v16, %v323_v61  ;;  %v333_v31 = vmax.f32 %v331_v34, %v332_v19  ;;  %v447_v41 = vrot.slane %v446_v20, 2  ;;  %v455_v42 = vmax.f32 %v453_v37, %v454_v21  ;;  %v605_v50 = vld [vmem:[%s1364_s6 + $0xa0] sm:$0xff]  ;;  %v591_v25 = vld [vmem:[%s1364_s6 + $0x30] sm:$0xff]  ;;  %v610_v33 = vld [vmem:[%s1364_s6 + $0xc8] sm:$0xff] }
  0x29   :  { %v342_v8 = vmax.f32 %v340_v18, %v341_v45  ;;  %v463_v43 = vrot.slane %v462_v22, 4  ;;  %v471_v46 = vmax.f32 %v469_v39, %v470_v23  ;;  %806 = vmatprep.subr.bf16.mxu1 %v805_v24  ;;  %v807_v48 = vpack.c.bf16 %v586_v40, %v585_v36  ;;  %v593_v39 = vld [vmem:[%s1364_s6 + $0x40] sm:$0xff]  ;;  %v594_v61 = vld [vmem:[%s1364_s6 + $0x48] sm:$0xff]  ;;  %v611_v21 = vld [vmem:[%s1364_s6 + $0xd0] sm:$0xff] }
  0x2a   :  { %v356_v52 = vsel %vm140_vm1, %v324_v30, %v315_v17  ;;  %v448_v53 = vmax.f32 %v446_v20, %v447_v41  ;;  %v456_v47 = vrot.slane %v455_v42, 2  ;;  %v809_v56 = vpack.c.bf16 %v604_v28, %v603_v27  ;;  %v612_v36 = vld [vmem:[%s1364_s6 + $0xd8] sm:$0xff]  ;;  %v595_v23 = vld [vmem:[%s1364_s6 + $0x50] sm:$0xff]  ;;  %v613_v27 = vld [vmem:[%s1364_s6 + $0xe0] sm:$0xff] }
  0x2b   :  { %v357_v57 = vsel %vm142_vm2, %v333_v31, %v356_v52  ;;  %v464_v63 = vmax.f32 %v462_v22, %v463_v43  ;;  %v472_v0 = vrot.slane %v471_v46, 4  ;;  %808 = vmatpush3.bf16.msra.mxu1 %v807_v48  ;;  %v811_v1 = vpack.c.bf16 %v588_v55, %v587_v49  ;;  %v596_v24 = vld [vmem:[%s1364_s6 + $0x58] sm:$0xff]  ;;  %v614_v28 = vld [vmem:[%s1364_s6 + $0xe8] sm:$0xff]  ;;  %v597_v41 = vld [vmem:[%s1364_s6 + $0x60] sm:$0xff] }
  0x2c   :  { %v358_v2 = vsel %vm144_vm3, %v342_v8, %v357_v57  ;;  %v449_v3 = vrot.slane %v448_v53, 1  ;;  %v457_v4 = vmax.f32 %v455_v42, %v456_v47  ;;  %810 = vmatprep.subr.bf16.mxu1 %v809_v56  ;;  %v813_v5 = vpack.c.bf16 %v606_v51, %v605_v50  ;;  %v598_v42 = vld [vmem:[%s1364_s6 + $0x68] sm:$0xff]  ;;  %v615_v55 = vld [vmem:[%s1364_s6 + $0xf0] sm:$0xff]  ;;  %v616_v8 = vld [vmem:[%s1364_s6 + $0xf8] sm:$0xff] }
  0x2d   :  { %727 = vmatmul.mubr.msk.f32.vlgmr.msra.gmra.mrb[0].mxu0 %vm38_vm0, %v358_v2  ;;  %v465_v10 = vrot.slane %v464_v63, 2  ;;  %v473_v11 = vmax.f32 %v471_v46, %v472_v0  ;;  %v803_v14 = vpack.c.bf16 %v734_v62, %v732_v59  ;;  %v815_v29 = vpack.c.bf16 %v590_v9, %v589_v6  ;;  %v599_v46 = vld [vmem:[%s1364_s6 + $0x70] sm:$0xff]  ;;  %v600_v48 = vld [vmem:[%s1364_s6 + $0x78] sm:$0xff]  ;;  %v569_v47 = vld [vmem:[%s1363_s5] sm:$0x3]  ;;  %s845_s5 = scalar_lea.vmem %s702_s26, 64 }
  0x2e   :  { %800 = vmatpush1.bf16.msra.mxu0 %v799_v54  ;;  %560 = vmatprep.mubr.f32.mxu0 %v869_v7  ;;  %v450_v15 = vmax.f32 %v448_v53, %v449_v3  ;;  %v458_v16 = vrot.slane %v457_v4, 1  ;;  %v817_v60 = vpack.c.bf16 %v608_v13, %v607_v12  ;;  %v592_v7 = vld [vmem:[%s1364_s6 + $0x38] sm:$0xff]  ;;  %v821_v38 = vpack.c.bf16 %v610_v33, %v609_v32  ;;  %v737_v6 = vld [vmem:[%s1365_s7] ss:$0 sm:$0xff]  ;;  %p846_p0 = scmp.ne.s32.totalorder %s702_s26, %s845_s5  ;;  %p851_p2 = scmp.lt.s32.totalorder %s845_s5, %s845_s5 }
  0x2f   :  { %802 = vmatprep.subr.bf16.mxu0 %v801_v58  ;;  %v466_v34 = vmax.f32 %v464_v63, %v465_v10  ;;  %v474_v35 = vrot.slane %v473_v11, 2  ;;  %812 = vmatpush3.bf16.msra.mxu1 %v811_v1  ;;  %v819_v18 = vpack.c.bf16 %v592_v7, %v591_v25  ;;  %v823_v45 = vpack.c.bf16 %v594_v61, %v593_v39 }
  0x30   :  { %v459_v37 = vmax.f32 %v457_v4, %v458_v16  ;;  %814 = vmatprep.subr.bf16.mxu1 %v813_v5  ;;  %v825_v22 = vpack.c.bf16 %v612_v36, %v611_v21  ;;  %v827_v30 = vpack.c.bf16 %v596_v24, %v595_v23  ;;  %v829_v31 = vpack.c.bf16 %v614_v28, %v613_v27  ;;  %p852_p3 = por %p851_p2, %p850_p1 }
  0x31   :  { %v467_v26 = vrot.slane %v466_v34, 1  ;;  %v475_v54 = vmax.f32 %v473_v11, %v474_v35  ;;  %v831_v49 = vpack.c.bf16 %v598_v42, %v597_v41  ;;  %v833_v43 = vpack.c.bf16 %v616_v8, %v615_v55 }
  0x32   :  { %804 = vmatpush1.bf16.msra.mxu0 %v803_v14  ;;  %v491_v58 = vsel %vm140_vm1, %v459_v37, %v450_v15  ;;  %v835_v50 = vpack.c.bf16 %v600_v48, %v599_v46  ;;  %v571_v51 = vlaneseq  ;;  %p853_p4 = pnand %p852_p3, %p846_p0 }
  0x33   :  { %v468_v44 = vmax.f32 %v466_v34, %v467_v26  ;;  %v476_v17 = vrot.slane %v475_v54, 1  ;;  %816 = vmatpush3.bf16.msra.mxu1 %v815_v29 }
  0x34   :  { %818 = vmatprep.subr.bf16.mxu1 %v817_v60  ;;  %v572_v52 = vshrl.u32 %v571_v51, 7 }
  0x35   :  { %v477_v19 = vmax.f32 %v475_v54, %v476_v17  ;;  %v492_v20 = vsel %vm142_vm2, %v468_v44, %v491_v58 }
  0x36   :  { %v573_v53 = vsub.s32 0, %v572_v52  ;;  %v577_v56 = vsub.s32 1, %v572_v52 }
  0x37   :  { %v493_v40 = vsel %vm144_vm3, %v477_v19, %v492_v20  ;;  %820 = vmatpush3.bf16.msra.mxu1 %v819_v18 }
  0x38   :  { %736 = vmatmul.mubr.msk.f32.vlgmr.msra.gmra.mrb[0].mxu0 %vm38_vm0, %v493_v40  ;;  %822 = vmatprep.subr.bf16.mxu1 %v821_v38  ;;  %v574_v57 = vrot.slane %v569_v47, %v573_v53  ;;  %v578_v59 = vrot.slane %v569_v47, %v577_v56 }
  0x3b   :  { %824 = vmatpush3.bf16.msra.mxu1 %v823_v45 }
  0x3c   :  { %826 = vmatprep.subr.bf16.mxu1 %v825_v22 }
  0x3f   :  { %828 = vmatpush3.bf16.msra.mxu1 %v827_v30 }
  0x40   :  { %830 = vmatprep.subr.bf16.mxu1 %v829_v31 }
  0x43   :  { %832 = vmatpush3.bf16.msra.mxu1 %v831_v49 }
  0x44   :  { %834 = vmatprep.subr.bf16.mxu1 %v833_v43 }
  0x47   :  { %836 = vmatpush3.bf16.msra.mxu1 %v835_v50 }
 0x10b   :  { %v562_v62 = vpop.f32.mrb[0].mxu0 }
 0x10c   :  { %v581_v63 = vadd.f32 %v574_v57, %v562_v62  ;;  %v564_v0 = vpop.f32.mrb[1].mxu0 }
 0x10d   :  { %v582_v1 = vadd.f32 %v578_v59, %v564_v0 }
 0x10e   :  { %v583_v3 = vmax.f32 %v581_v63, 0.0 }
 0x10f   :  { %v584_v2 = vmax.f32 %v582_v1, 0.0 }
 0x111   :  { %688 = vmatprep.mubr.f32.mxu1 %v584_v2 }
 0x112   :  { %689 = vmatmul.mubr.f32.vlgmr.msra.gmra.mrb[0].mxu1 %v583_v3 }
 0x1e5   :  { %v770_v4 = vpop.f32.mrb[0].mxu1 }
 0x1e6   :  { %v771_v5 = vpop.f32.mrb[1].mxu1 }
 0x1e7   :  { %v772_v9 = vadd.f32 %v771_v5, %v770_v4 }
 0x1e9   :  { %v691_v10 = vadd.f32 %v772_v9, %v737_v6 }
 0x1eb   :  { %694 = vst [vmem:[#allocation2] sm:$0xf] %v691_v10 }
 0x1ec   :  { %856 = shalt.err (!%p853_p4)
}
 0x1ed   :  { %s857_s28 = scalar_lea.hbm %s1366_s8, 64 }
 0x1ee   :  { %p858_p5 = scmp.ne.s32.totalorder %s1366_s8, %s857_s28  ;;  %p861_p6 = scmp.lt.u32.totalorder %s857_s28, %s1366_s8 }
 0x1f0   :  { %p863_p7 = pnand %p861_p6, %p858_p5 }
 0x1f2   :  { %866 = shalt.err (!%p863_p7)
}
 0x1f3   :  { %704 = dma.vmem_to_hbm [thread:$0]  %s702_s26, 64, %s1366_s8, [#allocation3]  }
 0x1f4   :  { %867 = dma.done.wait [#allocation3], 64  }
 0x1f5   :  { %868 = vsyncadd [#allocation3], 4294967232 }
 0x1f6   :  { %708 = vsyncpa [#allocation3], 1 }

</bundles_post_ra>
